<compile_context>
chip_gen: v7x
topology: tpu7x:2x2x1
jax: 0.10.0
libtpu: 0.0.40
codegen_flags: <defaults>
</compile_context>

<pallas_src>
import functools

import jax
import jax.numpy as jnp
from jax import lax
from jax.experimental import pallas as pl
from jax.experimental.pallas import tpu as pltpu


_LANE = 128
_SUBLANE = 8
_PAD_SENTINEL = 1e30   # ||W||^2 value for padded codebook rows (never wins argmin)


def _round_up(x, m):
    return (x + m - 1) // m * m


def _vq_kernel(ze_ref, w_ref, wsq_ref, zq_ref, loss_ref, *,
               tile_m, n_valid_rows, rows_padded, dots_in_bf16):
    ze = ze_ref[...].astype(jnp.float32)          # (TM, D)
    w = w_ref[...]                                # (Kp, D) f32 (zero-padded rows)
    wsq = wsq_ref[...]                            # (1, Kp) f32 (sentinel on pad rows)

    # cross term ze @ W^T: contract on D without materializing a transpose of W
    if dots_in_bf16:
        dots = lax.dot_general(ze.astype(jnp.bfloat16), w.astype(jnp.bfloat16),
                               (((1,), (1,)), ((), ())),
                               preferred_element_type=jnp.float32)     # (TM, Kp)
    else:
        dots = lax.dot_general(ze, w, (((1,), (1,)), ((), ())),
                               preferred_element_type=jnp.float32)     # (TM, Kp)

    # ||ze||^2 is constant along the codebook axis -> drop it from the score.
    # NOTE: `score` is NOT a true squared distance, only argmin-equivalent.
    score = wsq - 2.0 * dots                                           # (TM, Kp)

    # first-index argmin over codebook axis (matches torch.argmin tie-breaking)
    kp = score.shape[-1]
    iota = lax.broadcasted_iota(jnp.int32, score.shape, 1)             # (TM, Kp)
    min_s = jnp.min(score, axis=-1, keepdims=True)
    ix = jnp.min(jnp.where(score == min_s, iota, kp), axis=-1)         # (TM,)

    # embedding lookup as one-hot matmul (MXU-friendly gather)
    onehot = (iota == ix[:, None]).astype(jnp.float32)                 # (TM, Kp)
    zq = jnp.dot(onehot, w, preferred_element_type=jnp.float32)        # (TM, D)
    zq_ref[...] = zq.astype(zq_ref.dtype)

    # per-tile partial SSE for vq_loss (padded rows masked out); summing happens
    # in the wrapper, so the row axis stays race-free under "parallel" semantics.
    diff = zq - ze
    sq = diff * diff
    if rows_padded:
        row = pl.program_id(0) * tile_m + lax.broadcasted_iota(
            jnp.int32, (tile_m, 1), 0)
        sq = jnp.where(row < n_valid_rows, sq, 0.0)
    loss_ref[0, 0] = jnp.sum(sq)


def vector_quantizer_forward(ze, weight, *, tile_m=512, dots_in_bf16=False):
    """ze: (B, N, D) float, weight: (K, D) float -> (zq, vq_loss)."""
    B, N, D = ze.shape
    K, Dw = weight.shape
    assert D == Dw
    M = B * N

    # --- codebook padded along K to the 128-lane width --------------------
    K_pad = max(_LANE, _round_up(K, _LANE))
    w_pad = jnp.zeros((K_pad, D), jnp.float32).at[:K].set(
        weight.astype(jnp.float32))
    wsq = jnp.sum(w_pad * w_pad, axis=-1)
    wsq = jnp.where(jnp.arange(K_pad) < K, wsq,
                    jnp.float32(_PAD_SENTINEL))[None, :]               # (1, Kp)

    # --- row tiling: large tiles, sized against a portable VMEM budget ----
    tm = _round_up(min(tile_m, _round_up(M, _SUBLANE)), _SUBLANE)

    def vmem_estimate(t):
        tiles = 2 * 2 * t * D * 4                 # double-buffered ze + zq tiles
        book = 2 * (K_pad * D + K_pad) * 4        # double-buffered codebook + ||W||^2
        inter = 5 * t * K_pad * 4                 # dots/score/iota/onehot temporaries
        return tiles + book + inter

    while tm > _SUBLANE and vmem_estimate(tm) > 40 * 1024 * 1024:
        tm = _round_up(tm // 2, _SUBLANE)

    M_pad = _round_up(M, tm)
    grid = (M_pad // tm,)

    ze_flat = ze.reshape(M, D).astype(jnp.float32)
    if M_pad != M:
        ze_flat = jnp.pad(ze_flat, ((0, M_pad - M), (0, 0)))

    vmem_limit = int(min(max(2 * vmem_estimate(tm), 16 * 1024 * 1024),
                         48 * 1024 * 1024))

    kernel = functools.partial(
        _vq_kernel,
        tile_m=tm,
        n_valid_rows=M,
        rows_padded=(M_pad != M),
        dots_in_bf16=dots_in_bf16,
    )

    # TODO(synk): for very large codebooks (K beyond a few thousand), tile K
    # with an online running (min, argmin) instead of materializing (TM, K)
    # intermediates, and single-buffer the streamed codebook blocks
    # (pipeline_mode=pl.Buffered(1)) since their index_map is constant.
    # TODO(synk): for small D a lane-dense (M*D/128, 128) I/O layout would
    # improve the store path, but needs verification that the in-kernel
    # reshape does not introduce a relayout copy.
    zq_flat, loss_part = pl.pallas_call(
        kernel,
        out_shape=(
            jax.ShapeDtypeStruct((M_pad, D), ze.dtype),
            jax.ShapeDtypeStruct((grid[0], 1), jnp.float32),
        ),
        grid_spec=pltpu.PrefetchScalarGridSpec(
            num_scalar_prefetch=0,
            grid=grid,
            in_specs=[
                pl.BlockSpec((tm, D), lambda i: (i, 0)),       # ze row tile
                pl.BlockSpec((K_pad, D), lambda i: (0, 0)),    # full codebook
                pl.BlockSpec((1, K_pad), lambda i: (0, 0)),    # ||W||^2 (+sentinel)
            ],
            out_specs=(
                pl.BlockSpec((tm, D), lambda i: (i, 0)),       # zq row tile
                pl.BlockSpec((1, 1), lambda i: (i, 0),
                             memory_space=pltpu.SMEM),          # per-tile partial SSE
            ),
        ),
        compiler_params=pltpu.CompilerParams(
            dimension_semantics=("parallel",),   # per-tile outputs -> no cross-tile state
            vmem_limit_bytes=vmem_limit,
        ),
    )(ze_flat, w_pad, wsq)

    zq = zq_flat[:M].reshape(B, N, D)

    # vq_loss = mse(zq.detach(), ze) + mse(zq, ze.detach()) -> forward value 2*MSE
    vq_loss = 2.0 * jnp.sum(loss_part) / jnp.float32(M * D)

    # straight-through estimator (forward value of zq unchanged)
    zq_st = ze + lax.stop_gradient(zq - ze)
    return zq_st, vq_loss


def _reference(ze, weight):
    # plain-JAX reference matching the PyTorch forward
    d2 = jnp.sum((ze[:, :, None, :] - weight[None, None, :, :]) ** 2, axis=-1)
    ix = jnp.argmin(d2, axis=2)
    zq = weight[ix]
    loss = 2.0 * jnp.mean((zq - ze) ** 2)
    return ze + lax.stop_gradient(zq - ze), loss


if __name__ == "__main__":
    key = jax.random.PRNGKey(0)
    k_ze, k_w, k_ze2, k_w2 = jax.random.split(key, 4)

    # --- primary check: aligned shapes, single large tile -----------------
    B, N, D = 2, 64, 32       # batch, tokens per batch, embedding dim
    K = 64                    # n_emb (nclass)
    ze = jax.random.normal(k_ze, (B, N, D), dtype=jnp.float32)
    weight = jax.random.normal(k_w, (K, D), dtype=jnp.float32)   # nn.Embedding ~ N(0,1)

    zq, vq_loss = vector_quantizer_forward(ze, weight)
    zq = jax.block_until_ready(zq)
    vq_loss = jax.block_until_ready(vq_loss)

    zq_ref, loss_ref = _reference(ze, weight)
    assert jnp.allclose(zq, zq_ref, atol=1e-4, rtol=1e-4), "zq mismatch"
    assert jnp.allclose(vq_loss, loss_ref, atol=1e-4, rtol=1e-4), "loss mismatch"

    # --- secondary check: ragged rows + multi-tile grid + K padding --------
    B2, N2, D2, K2 = 2, 60, 32, 48
    ze2 = jax.random.normal(k_ze2, (B2, N2, D2), dtype=jnp.float32)
    weight2 = jax.random.normal(k_w2, (K2, D2), dtype=jnp.float32)

    zq2, vq_loss2 = vector_quantizer_forward(ze2, weight2, tile_m=64)
    zq2 = jax.block_until_ready(zq2)
    vq_loss2 = jax.block_until_ready(vq_loss2)

    zq2_ref, loss2_ref = _reference(ze2, weight2)
    assert jnp.allclose(zq2, zq2_ref, atol=1e-4, rtol=1e-4), "zq mismatch (ragged)"
    assert jnp.allclose(vq_loss2, loss2_ref, atol=1e-4, rtol=1e-4), "loss mismatch (ragged)"

    print("KERNEL_OK")
</pallas_src>

<mosaic_0001>
module attributes {stable_mosaic.version = 11 : i64} {
  func.func @_vq_kernel(%arg0: i32, %arg1: memref<128x32xf32, #tpu.memory_space<vmem>>, %arg2: memref<128x32xf32, #tpu.memory_space<vmem>>, %arg3: memref<1x128xf32, #tpu.memory_space<vmem>>, %arg4: memref<128x32xf32, #tpu.memory_space<vmem>>, %arg5: memref<1x1xf32, #tpu.memory_space<smem>>) attributes {dimension_semantics = [#tpu.dimension_semantics<parallel>], iteration_bounds = array<i64: 1>, scalar_prefetch = 0 : i64, scratch_operands = 0 : i64, tpu.core_type = #tpu.core_type<tc>, window_params = [{transform_indices = @transform_0, window_bounds = array<i64: 128, 32>}, {pipeline_mode = #tpu.pipeline_mode<synchronous>, transform_indices = @transform_1, window_bounds = array<i64: 128, 32>}, {pipeline_mode = #tpu.pipeline_mode<synchronous>, transform_indices = @transform_2, window_bounds = array<i64: 1, 128>}, {transform_indices = @transform_3, window_bounds = array<i64: 128, 32>}, {transform_indices = @transform_4, window_bounds = array<i64: 1, 1>}]} {
    %c0 = arith.constant 0 : index
    %c0_0 = arith.constant 0 : index
    %0 = vector.load %arg1[%c0, %c0_0] : memref<128x32xf32, #tpu.memory_space<vmem>>, vector<128x32xf32>
    %c0_1 = arith.constant 0 : index
    %c0_2 = arith.constant 0 : index
    %1 = vector.load %arg2[%c0_1, %c0_2] : memref<128x32xf32, #tpu.memory_space<vmem>>, vector<128x32xf32>
    %c0_3 = arith.constant 0 : index
    %c0_4 = arith.constant 0 : index
    %2 = vector.load %arg3[%c0_3, %c0_4] : memref<1x128xf32, #tpu.memory_space<vmem>>, vector<1x128xf32>
    %cst = arith.constant dense<0.000000e+00> : vector<128x128xf32>
    %3 = tpu.matmul %0, %1, %cst {dimension_numbers = #tpu.dot_dimension_numbers<[1], [1], [0], [0], [0, 0, 1, 0], [], []>} : vector<128x32xf32>, vector<128x32xf32>, vector<128x128xf32> -> vector<128x128xf32>
    %cst_5 = arith.constant 2.000000e+00 : f32
    %4 = vector.broadcast %cst_5 : f32 to vector<128x128xf32>
    %5 = arith.mulf %4, %3 : vector<128x128xf32>
    %6 = vector.broadcast %2 : vector<1x128xf32> to vector<128x128xf32>
    %7 = arith.subf %6, %5 : vector<128x128xf32>
    %8 = tpu.iota {dimensions = array<i32: 1>} : vector<128x128xi32>
    %cst_6 = arith.constant dense<0x7F800000> : vector<128xf32>
    %9 = vector.multi_reduction <minimumf>, %7, %cst_6 [1] : vector<128x128xf32> to vector<128xf32>
    %10 = vector.shape_cast %9 : vector<128xf32> to vector<128x1xf32>
    %11 = vector.broadcast %10 : vector<128x1xf32> to vector<128x128xf32>
    %12 = arith.cmpf oeq, %7, %11 : vector<128x128xf32>
    %c128_i32 = arith.constant 128 : i32
    %13 = vector.broadcast %c128_i32 : i32 to vector<128x128xi32>
    %14 = arith.select %12, %8, %13 : vector<128x128xi1>, vector<128x128xi32>
    %cst_7 = arith.constant dense<2147483647> : vector<128xi32>
    %15 = vector.multi_reduction <minsi>, %14, %cst_7 [1] : vector<128x128xi32> to vector<128xi32>
    %16 = vector.shape_cast %15 : vector<128xi32> to vector<128x1xi32>
    %17 = vector.broadcast %16 : vector<128x1xi32> to vector<128x128xi32>
    %18 = arith.cmpi eq, %8, %17 : vector<128x128xi32>
    %19 = arith.extui %18 : vector<128x128xi1> to vector<128x128xi32>
    %20 = arith.sitofp %19 : vector<128x128xi32> to vector<128x128xf32>
    %cst_8 = arith.constant dense<0.000000e+00> : vector<128x32xf32>
    %21 = tpu.matmul %20, %1, %cst_8 {dimension_numbers = #tpu.dot_dimension_numbers<[1], [0], [0], [1], [0, 0, 1, 1], [], []>} : vector<128x128xf32>, vector<128x32xf32>, vector<128x32xf32> -> vector<128x32xf32>
    %c0_9 = arith.constant 0 : index
    %c0_10 = arith.constant 0 : index
    %22 = vector.load %arg4[%c0_9, %c0_10] : memref<128x32xf32, #tpu.memory_space<vmem>>, vector<128x32xf32>
    tpu.vector_store %arg4[%c0_9, %c0_10], %21 {strides = array<i32>} : memref<128x32xf32, #tpu.memory_space<vmem>>, vector<128x32xf32>,
    %23 = arith.subf %21, %0 : vector<128x32xf32>
    %24 = arith.mulf %23, %23 : vector<128x32xf32>
    %25 = vector.shape_cast %24 : vector<128x32xf32> to vector<1x128x32xf32>
    %cst_11 = arith.constant dense<0.000000e+00> : vector<1xf32>
    %26 = vector.multi_reduction <add>, %25, %cst_11 [1, 2] : vector<1x128x32xf32> to vector<1xf32>
    %27 = vector.shape_cast %26 : vector<1xf32> to vector<1x1x1xf32>
    %28 = vector.extract %27[0, 0, 0] : f32 from vector<1x1x1xf32>
    %c0_12 = arith.constant 0 : index
    %c0_13 = arith.constant 0 : index
    %29 = memref.load %arg5[%c0_12, %c0_13] : memref<1x1xf32, #tpu.memory_space<smem>>
    memref.store %28, %arg5[%c0_12, %c0_13] : memref<1x1xf32, #tpu.memory_space<smem>>
    return
  }
  func.func @transform_0(%arg0: i32) -> (i32, i32) {
    %c0_i32 = arith.constant 0 : i32
    %c0_i32_0 = arith.constant 0 : i32
    return %arg0, %c0_i32 : i32, i32
  }
  func.func @transform_1(%arg0: i32) -> (i32, i32) {
    %c0_i32 = arith.constant 0 : i32
    %c0_i32_0 = arith.constant 0 : i32
    %c0_i32_1 = arith.constant 0 : i32
    return %c0_i32, %c0_i32_0 : i32, i32
  }
  func.func @transform_2(%arg0: i32) -> (i32, i32) {
    %c0_i32 = arith.constant 0 : i32
    %c0_i32_0 = arith.constant 0 : i32
    %c0_i32_1 = arith.constant 0 : i32
    return %c0_i32, %c0_i32_0 : i32, i32
  }
  func.func @transform_3(%arg0: i32) -> (i32, i32) {
    %c0_i32 = arith.constant 0 : i32
    %c0_i32_0 = arith.constant 0 : i32
    return %arg0, %c0_i32 : i32, i32
  }
  func.func @transform_4(%arg0: i32) -> (i32, i32) {
    %c0_i32 = arith.constant 0 : i32
    %c0_i32_0 = arith.constant 0 : i32
    return %arg0, %c0_i32 : i32, i32
  }
}

</mosaic_0001>

<bundles_post_ra>
// kernel: tpu_custom_call.1
= control target key start
LH: loop header
LB: loop body
LE: loop exit
PB: predicated region body
PF: predicated region fallthrough
CT: control target
= control target key end

     0   :  { %vm50_vm0 = vcmask 261120   ;;  %s1899_s0 = inlined_call_operand.vmem [shape: f32[128,32], index: 0, kind: input, shape index: {}]   ;;  %s1900_s1 = inlined_call_operand.vmem [shape: f32[128,32], index: 1, kind: input, shape index: {}]   ;;  %s1901_s2 = inlined_call_operand.vmem [shape: f32[1,128], index: 2, kind: input, shape index: {}]   ;;  %s1902_s3 = inlined_call_operand.vmem [shape: f32[128,32], index: 3, kind: output, shape index: {0}]   ;;  %s1903_s4 = inlined_call_operand.hbm [shape: f32[1,1], index: 4, kind: output, shape index: {1}]  }
   0x1   :  { %v33_v0 = vld [vmem:[%s1900_s1] sm:$0xff]  ;;  %v34_v1 = vld [vmem:[%s1900_s1 + $0x8] sm:$0xff]  ;;  %v35_v2 = vld [vmem:[%s1900_s1 + $0x10] sm:$0xff] }
   0x2   :  { %v1161_v3 = vpack.c.bf16 %v34_v1, %v33_v0  ;;  %vm1295_vm1 = vmpackc.low %vm50_vm0, %vm50_vm0  ;;  %v36_v5 = vld [vmem:[%s1900_s1 + $0x18] sm:$0xff]  ;;  %v37_v7 = vld [vmem:[%s1900_s1 + $0x20] sm:$0xff] }
   0x3   :  { %v1167_v6 = vpack.c.bf16 %v36_v5, %v35_v2  ;;  %v38_v8 = vld [vmem:[%s1900_s1 + $0x28] sm:$0xff]  ;;  %v1317_v9 = vld [vmem:[%s1899_s0] sm:$0xff]  ;;  %v39_v11 = vld [vmem:[%s1900_s1 + $0x30] sm:$0xff] }
   0x4   :  { %1163 = vmatprep.subr.msk.bf16.mxu0 %vm1295_vm1, %v1161_v3  ;;  %1210 = vmatprep.subr.bf16.mxu1 %v1161_v3  ;;  %v1173_v10 = vpack.c.bf16 %v38_v8, %v37_v7  ;;  %v40_v12 = vld [vmem:[%s1900_s1 + $0x38] sm:$0xff] }
   0x5   :  { %1166 = vmatpush3.bf16.xpose.msk.msra.mxu0 %vm1295_vm1, %v1161_v3  ;;  %1212 = vmatpush3.bf16.msra.mxu1 %v1161_v3  ;;  %v1179_v13 = vpack.c.bf16 %v40_v12, %v39_v11 }
   0x6   :  { %1169 = vmatprep.subr.msk.bf16.mxu0 %vm1295_vm1, %v1167_v6  ;;  %1214 = vmatprep.subr.bf16.mxu1 %v1167_v6 }
   0x7   :  { %1081 = vmatprep.mubr.msk.f32.mxu0 %vm50_vm0, %v1317_v9 }
   0x9   :  { %1216 = vmatpush3.bf16.msra.mxu1 %v1167_v6 }
   0xa   :  { %1218 = vmatprep.subr.bf16.mxu1 %v1173_v10 }
   0xb   :  { %10 = vsyncpa [#allocation3], 0  ;;  %v41_v14 = vld [vmem:[%s1900_s1 + $0x40] sm:$0xff]  ;;  %v42_v15 = vld [vmem:[%s1900_s1 + $0x48] sm:$0xff]  ;;  %s1245_s30 = scalar_lea.hbm %s1903_s4, 16 }
   0xc   :  { %v1185_v16 = vpack.c.bf16 %v42_v15, %v41_v14  ;;  %v43_v17 = vld [vmem:[%s1900_s1 + $0x50] sm:$0xff]  ;;  %v44_v18 = vld [vmem:[%s1900_s1 + $0x58] sm:$0xff]  ;;  %v45_v20 = vld [vmem:[%s1900_s1 + $0x60] sm:$0xff]  ;;  %p1246_p0 = scmp.ne.s32.totalorder %s1903_s4, %s1245_s30  ;;  %p1249_p1 = scmp.lt.u32.totalorder %s1245_s30, %s1903_s4 }
   0xd   :  { %1172 = vmatpush3.bf16.xpose.msk.msra.mxu0 %vm1295_vm1, %v1167_v6  ;;  %1220 = vmatpush3.bf16.msra.mxu1 %v1173_v10  ;;  %v1191_v19 = vpack.c.bf16 %v44_v18, %v43_v17  ;;  %v46_v21 = vld [vmem:[%s1900_s1 + $0x68] sm:$0xff]  ;;  %v47_v23 = vld [vmem:[%s1900_s1 + $0x70] sm:$0xff]  ;;  %v48_v24 = vld [vmem:[%s1900_s1 + $0x78] sm:$0xff] }
   0xe   :  { %1175 = vmatprep.subr.msk.bf16.mxu0 %vm1295_vm1, %v1173_v10  ;;  %1222 = vmatprep.subr.bf16.mxu1 %v1179_v13  ;;  %v1197_v22 = vpack.c.bf16 %v46_v21, %v45_v20  ;;  %v1203_v25 = vpack.c.bf16 %v48_v24, %v47_v23  ;;  %v1380_v26 = vld [vmem:[%s1899_s0 + $0x8] sm:$0xff]  ;;  %v1385_v27 = vld [vmem:[%s1899_s0 + $0x10] sm:$0xff]  ;;  %v1394_v28 = vld [vmem:[%s1899_s0 + $0x18] sm:$0xff]  ;;  %p1251_p2 = pnand %p1249_p1, %p1246_p0 }
   0xf   :  { %v1399_v29 = vld [vmem:[%s1899_s0 + $0x20] sm:$0xff]  ;;  %v1408_v30 = vld [vmem:[%s1899_s0 + $0x28] sm:$0xff]  ;;  %v1413_v31 = vld [vmem:[%s1899_s0 + $0x30] sm:$0xff] }
  0x10   :  { %v1422_v32 = vld [vmem:[%s1899_s0 + $0x38] sm:$0xff]  ;;  %v1427_v33 = vld [vmem:[%s1899_s0 + $0x40] sm:$0xff]  ;;  %v1436_v34 = vld [vmem:[%s1899_s0 + $0x48] sm:$0xff] }
  0x11   :  { %1224 = vmatpush3.bf16.msra.mxu1 %v1179_v13  ;;  %v1441_v35 = vld [vmem:[%s1899_s0 + $0x50] sm:$0xff]  ;;  %v1450_v36 = vld [vmem:[%s1899_s0 + $0x58] sm:$0xff]  ;;  %v1455_v37 = vld [vmem:[%s1899_s0 + $0x60] sm:$0xff] }
  0x12   :  { %1226 = vmatprep.subr.bf16.mxu1 %v1185_v16  ;;  %v1464_v38 = vld [vmem:[%s1899_s0 + $0x68] sm:$0xff]  ;;  %v1469_v39 = vld [vmem:[%s1899_s0 + $0x70] sm:$0xff]  ;;  %v1478_v40 = vld [vmem:[%s1899_s0 + $0x78] sm:$0xff] }
  0x13   :  { %v952_v43 = vld [vmem:[%s1901_s2] ss:$0 sm:$0xff] }
  0x15   :  { %1178 = vmatpush3.bf16.xpose.msk.msra.mxu0 %vm1295_vm1, %v1173_v10  ;;  %1228 = vmatpush3.bf16.msra.mxu1 %v1185_v16 }
  0x16   :  { %1181 = vmatprep.subr.msk.bf16.mxu0 %vm1295_vm1, %v1179_v13  ;;  %1230 = vmatprep.subr.bf16.mxu1 %v1191_v19 }
  0x19   :  { %1232 = vmatpush3.bf16.msra.mxu1 %v1191_v19 }
  0x1a   :  { %1234 = vmatprep.subr.bf16.mxu1 %v1197_v22 }
  0x1d   :  { %1184 = vmatpush3.bf16.xpose.msk.msra.mxu0 %vm1295_vm1, %v1179_v13  ;;  %1236 = vmatpush3.bf16.msra.mxu1 %v1197_v22 }
  0x1e   :  { %1187 = vmatprep.subr.msk.bf16.mxu0 %vm1295_vm1, %v1185_v16  ;;  %1238 = vmatprep.subr.bf16.mxu1 %v1203_v25 }
  0x21   :  { %1240 = vmatpush3.bf16.msra.mxu1 %v1203_v25 }
  0x25   :  { %1190 = vmatpush3.bf16.xpose.msk.msra.mxu0 %vm1295_vm1, %v1185_v16 }
  0x26   :  { %1193 = vmatprep.subr.msk.bf16.mxu0 %vm1295_vm1, %v1191_v19 }
  0x2d   :  { %1196 = vmatpush3.bf16.xpose.msk.msra.mxu0 %vm1295_vm1, %v1191_v19 }
  0x2e   :  { %1199 = vmatprep.subr.msk.bf16.mxu0 %vm1295_vm1, %v1197_v22 }
  0x35   :  { %1202 = vmatpush3.bf16.xpose.msk.msra.mxu0 %vm1295_vm1, %v1197_v22 }
  0x36   :  { %1205 = vmatprep.subr.msk.bf16.mxu0 %vm1295_vm1, %v1203_v25 }
  0x3d   :  { %1208 = vmatpush3.bf16.xpose.msk.msra.mxu0 %vm1295_vm1, %v1203_v25 }
  0x44   :  { %1082 = vmatmul.mubr.msk.f32.vlgmr.msra.gmra.mrb[0].mxu0 %vm50_vm0, %v1380_v26 }
  0x45   :  { %1084 = vmatprep.mubr.msk.f32.mxu0 %vm50_vm0, %v1385_v27 }
  0x48   :  { %1085 = vmatmul.mubr.msk.f32.gmra.mrb[2].mxu0 %vm50_vm0, %v1394_v28 }
  0x49   :  { %1087 = vmatprep.mubr.msk.f32.mxu0 %vm50_vm0, %v1399_v29 }
  0x4c   :  { %1088 = vmatmul.mubr.msk.f32.gmra.mrb[4].mxu0 %vm50_vm0, %v1408_v30 }
  0x4d   :  { %1090 = vmatprep.mubr.msk.f32.mxu0 %vm50_vm0, %v1413_v31 }
  0x50   :  { %1091 = vmatmul.mubr.msk.f32.gmra.mrb[6].mxu0 %vm50_vm0, %v1422_v32 }
  0x51   :  { %1093 = vmatprep.mubr.msk.f32.mxu0 %vm50_vm0, %v1427_v33 }
  0x54   :  { %1094 = vmatmul.mubr.msk.f32.gmra.mrb[8].mxu0 %vm50_vm0, %v1436_v34 }
  0x55   :  { %1096 = vmatprep.mubr.msk.f32.mxu0 %vm50_vm0, %v1441_v35 }
  0x58   :  { %1097 = vmatmul.mubr.msk.f32.gmra.mrb[10].mxu0 %vm50_vm0, %v1450_v36 }
  0x59   :  { %1099 = vmatprep.mubr.msk.f32.mxu0 %vm50_vm0, %v1455_v37 }
  0x5c   :  { %1100 = vmatmul.mubr.msk.f32.gmra.mrb[12].mxu0 %vm50_vm0, %v1464_v38 }
  0x5d   :  { %1102 = vmatprep.mubr.msk.f32.mxu0 %vm50_vm0, %v1469_v39 }
  0x60   :  { %1103 = vmatmul.mubr.msk.f32.gmra.mrb[14].mxu0 %vm50_vm0, %v1478_v40 }
 0x117   :  { %v1083_v41 = vpop.f32.mrb[0].mxu0 }
 0x118   :  { %v213_v42 = vpop.f32.mrb[1].mxu0  ;;  %v293_v45 = vmul.f32 2.0, %v1083_v41 }
 0x119   :  { %v292_v44 = vmul.f32 2.0, %v213_v42  ;;  %v330_v42 = vlaneseq }
 0x11a   :  { %v1488_v52 = vsub.f32 %v952_v43, %v293_v45 }
 0x11b   :  { %v1086_v46 = vpop.f32.mrb[2].mxu0  ;;  %v1485_v47 = vsub.f32 %v952_v43, %v292_v44  ;;  %v1533_v44 = vand.u32 127, %v330_v42 }
 0x11c   :  { %v223_v48 = vpop.f32.mrb[3].mxu0  ;;  %v295_v50 = vmul.f32 2.0, %v1086_v46 }
 0x11d   :  { %v294_v49 = vmul.f32 2.0, %v223_v48  ;;  %332 = vmin.xlane.f32.xlu0 %v1485_v47 }
 0x11e   :  { %v1494_v58 = vsub.f32 %v952_v43, %v295_v50 }
 0x11f   :  { %v1089_v51 = vpop.f32.mrb[4].mxu0  ;;  %v1490_v53 = vsub.f32 %v952_v43, %v294_v49 }
 0x120   :  { %v233_v54 = vpop.f32.mrb[5].mxu0  ;;  %v297_v56 = vmul.f32 2.0, %v1089_v51 }
 0x121   :  { %v296_v55 = vmul.f32 2.0, %v233_v54  ;;  %334 = vmin.xlane.f32.xlu0 %v1488_v52  ;;  %336 = vmin.xlane.f32.xlu1 %v1490_v53 }
 0x122   :  { %v1500_v0 = vsub.f32 %v952_v43, %v297_v56 }
 0x123   :  { %v1092_v57 = vpop.f32.mrb[6].mxu0  ;;  %v1496_v59 = vsub.f32 %v952_v43, %v296_v55 }
 0x124   :  { %v243_v60 = vpop.f32.mrb[7].mxu0  ;;  %v299_v62 = vmul.f32 2.0, %v1092_v57 }
 0x125   :  { %v298_v61 = vmul.f32 2.0, %v243_v60  ;;  %338 = vmin.xlane.f32.xlu1 %v1494_v58  ;;  %340 = vmin.xlane.f32.xlu0 %v1496_v59 }
 0x126   :  { %v1506_v6 = vsub.f32 %v952_v43, %v299_v62 }
 0x127   :  { %v1095_v63 = vpop.f32.mrb[8].mxu0  ;;  %v1502_v1 = vsub.f32 %v952_v43, %v298_v61 }
 0x128   :  { %v253_v2 = vpop.f32.mrb[9].mxu0  ;;  %v301_v4 = vmul.f32 2.0, %v1095_v63 }
 0x129   :  { %v300_v3 = vmul.f32 2.0, %v253_v2  ;;  %342 = vmin.xlane.f32.xlu1 %v1500_v0  ;;  %344 = vmin.xlane.f32.xlu0 %v1502_v1 }
 0x12a   :  { %v1512_v13 = vsub.f32 %v952_v43, %v301_v4 }
 0x12b   :  { %v1098_v5 = vpop.f32.mrb[10].mxu0  ;;  %v1508_v7 = vsub.f32 %v952_v43, %v300_v3 }
 0x12c   :  { %v263_v8 = vpop.f32.mrb[11].mxu0  ;;  %v303_v11 = vmul.f32 2.0, %v1098_v5 }
 0x12d   :  { %v302_v10 = vmul.f32 2.0, %v263_v8  ;;  %346 = vmin.xlane.f32.xlu1 %v1506_v6  ;;  %348 = vmin.xlane.f32.xlu0 %v1508_v7 }
 0x12e   :  { %v1518_v19 = vsub.f32 %v952_v43, %v303_v11 }
 0x12f   :  { %v1101_v12 = vpop.f32.mrb[12].mxu0  ;;  %v1514_v14 = vsub.f32 %v952_v43, %v302_v10 }
 0x130   :  { %v273_v15 = vpop.f32.mrb[13].mxu0  ;;  %v305_v17 = vmul.f32 2.0, %v1101_v12 }
 0x131   :  { %v304_v16 = vmul.f32 2.0, %v273_v15  ;;  %350 = vmin.xlane.f32.xlu1 %v1512_v13  ;;  %352 = vmin.xlane.f32.xlu0 %v1514_v14 }
 0x132   :  { %v1524_v24 = vsub.f32 %v952_v43, %v305_v17 }
 0x133   :  { %v1104_v18 = vpop.f32.mrb[14].mxu0  ;;  %v1520_v20 = vsub.f32 %v952_v43, %v304_v16 }
 0x134   :  { %v283_v21 = vpop.f32.mrb[15].mxu0  ;;  %v307_v23 = vmul.f32 2.0, %v1104_v18 }
 0x135   :  { %v306_v22 = vmul.f32 2.0, %v283_v21  ;;  %354 = vmin.xlane.f32.xlu1 %v1518_v19  ;;  %356 = vmin.xlane.f32.xlu0 %v1520_v20 }
 0x136   :  { %v1530_v41 = vsub.f32 %v952_v43, %v307_v23 }
 0x137   :  { %v1526_v25 = vsub.f32 %v952_v43, %v306_v22 }
 0x139   :  { %358 = vmin.xlane.f32.xlu1 %v1524_v24  ;;  %360 = vmin.xlane.f32.xlu0 %v1526_v25 }
 0x13d   :  { %362 = vmin.xlane.f32.xlu1 %v1530_v41 }
 0x1aa   :  { %v333_v45 = vpop.xlane.xlu0 %332 }
 0x1ab   :  { %vm364_vm2 = vcmp.eq.f32.partialorder %v1485_v47, %v333_v45 }
 0x1ac   :  { %v1537_v46 = vsel %vm364_vm2, %v1533_v44, 128 }
 0x1ad   :  { %v397_v48 = vshra.s32 %v1537_v46, 16 }
 0x1ae   :  { %v335_v49 = vpop.xlane.xlu0 %334  ;;  %v337_v50 = vpop.xlane.xlu1 %336 }
 0x1af   :  { %vm365_vm3 = vcmp.eq.f32.partialorder %v1488_v52, %v335_v49  ;;  %vm366_vm4 = vcmp.eq.f32.partialorder %v1490_v53, %v337_v50  ;;  %v1542_v43 = vcvt.s32.f32 %v397_v48 }
 0x1b0   :  { %v1545_v51 = vsel %vm365_vm3, %v1533_v44, 128  ;;  %v1548_v54 = vsel %vm366_vm4, %v1533_v44, 128 }
 0x1b1   :  { %400 = vmin.xlane.f32.xlu0 %v1542_v43  ;;  %v411_v47 = vshra.s32 %v1545_v51, 16  ;;  %v425_v55 = vshra.s32 %v1548_v54, 16 }
 0x1b2   :  { %v339_v56 = vpop.xlane.xlu1 %338  ;;  %v341_v57 = vpop.xlane.xlu0 %340 }
 0x1b3   :  { %vm367_vm5 = vcmp.eq.f32.partialorder %v1494_v58, %v339_v56  ;;  %vm368_vm6 = vcmp.eq.f32.partialorder %v1496_v59, %v341_v57  ;;  %v1555_v52 = vcvt.s32.f32 %v411_v47  ;;  %v1557_v53 = vcvt.s32.f32 %v425_v55 }
 0x1b4   :  { %v1560_v60 = vsel %vm367_vm5, %v1533_v44, 128  ;;  %v1563_v61 = vsel %vm368_vm6, %v1533_v44, 128 }
 0x1b5   :  { %414 = vmin.xlane.f32.xlu1 %v1555_v52  ;;  %428 = vmin.xlane.f32.xlu0 %v1557_v53  ;;  %v439_v62 = vshra.s32 %v1560_v60, 16  ;;  %v453_v58 = vshra.s32 %v1563_v61, 16 }
 0x1b6   :  { %v343_v63 = vpop.xlane.xlu1 %342  ;;  %v345_v59 = vpop.xlane.xlu0 %344 }
 0x1b7   :  { %vm369_vm7 = vcmp.eq.f32.partialorder %v1500_v0, %v343_v63  ;;  %vm370_vm8 = vcmp.eq.f32.partialorder %v1502_v1, %v345_v59  ;;  %v1571_v2 = vcvt.s32.f32 %v439_v62  ;;  %v1573_v3 = vcvt.s32.f32 %v453_v58 }
 0x1b8   :  { %v1576_v4 = vsel %vm369_vm7, %v1533_v44, 128  ;;  %v1579_v5 = vsel %vm370_vm8, %v1533_v44, 128 }
 0x1b9   :  { %442 = vmin.xlane.f32.xlu1 %v1571_v2  ;;  %456 = vmin.xlane.f32.xlu0 %v1573_v3  ;;  %v467_v8 = vshra.s32 %v1576_v4, 16  ;;  %v481_v0 = vshra.s32 %v1579_v5, 16 }
 0x1ba   :  { %v347_v10 = vpop.xlane.xlu1 %346  ;;  %v349_v1 = vpop.xlane.xlu0 %348 }
 0x1bb   :  { %vm371_vm9 = vcmp.eq.f32.partialorder %v1506_v6, %v347_v10  ;;  %vm372_vm10 = vcmp.eq.f32.partialorder %v1508_v7, %v349_v1  ;;  %v1587_v11 = vcvt.s32.f32 %v467_v8  ;;  %v1589_v12 = vcvt.s32.f32 %v481_v0 }
 0x1bc   :  { %v1592_v15 = vsel %vm371_vm9, %v1533_v44, 128  ;;  %v1595_v16 = vsel %vm372_vm10, %v1533_v44, 128 }
 0x1bd   :  { %470 = vmin.xlane.f32.xlu1 %v1587_v11  ;;  %484 = vmin.xlane.f32.xlu0 %v1589_v12  ;;  %v495_v17 = vshra.s32 %v1592_v15, 16  ;;  %v509_v6 = vshra.s32 %v1595_v16, 16 }
 0x1be   :  { %v351_v18 = vpop.xlane.xlu1 %350  ;;  %v353_v7 = vpop.xlane.xlu0 %352 }
 0x1bf   :  { %vm373_vm11 = vcmp.eq.f32.partialorder %v1512_v13, %v351_v18  ;;  %vm374_vm12 = vcmp.eq.f32.partialorder %v1514_v14, %v353_v7  ;;  %v1603_v21 = vcvt.s32.f32 %v495_v17  ;;  %v1605_v22 = vcvt.s32.f32 %v509_v6 }
 0x1c0   :  { %v1608_v23 = vsel %vm373_vm11, %v1533_v44, 128  ;;  %v1611_v42 = vsel %vm374_vm12, %v1533_v44, 128  ;;  %v396_v18 = vand.u32 65535, %v1537_v46  ;;  %v424_v7 = vand.u32 65535, %v1548_v54 }
 0x1c1   :  { %498 = vmin.xlane.f32.xlu1 %v1603_v21  ;;  %512 = vmin.xlane.f32.xlu0 %v1605_v22  ;;  %v523_v45 = vshra.s32 %v1608_v23, 16  ;;  %v537_v13 = vshra.s32 %v1611_v42, 16 }
 0x1c2   :  { %v355_v48 = vpop.xlane.xlu1 %354  ;;  %v357_v14 = vpop.xlane.xlu0 %356 }
 0x1c3   :  { %vm375_vm13 = vcmp.eq.f32.partialorder %v1518_v19, %v355_v48  ;;  %vm376_vm14 = vcmp.eq.f32.partialorder %v1520_v20, %v357_v14  ;;  %v1619_v49 = vcvt.s32.f32 %v523_v45  ;;  %v1621_v50 = vcvt.s32.f32 %v537_v13 }
 0x1c4   :  { %v1624_v47 = vsel %vm375_vm13, %v1533_v44, 128  ;;  %v1627_v55 = vsel %vm376_vm14, %v1533_v44, 128  ;;  %v398_v13 = vcvt.s32.f32 %v396_v18  ;;  %v438_v14 = vand.u32 65535, %v1560_v60 }
 0x1c5   :  { %526 = vmin.xlane.f32.xlu1 %v1619_v49  ;;  %540 = vmin.xlane.f32.xlu0 %v1621_v50  ;;  %v551_v56 = vshra.s32 %v1624_v47, 16  ;;  %v565_v19 = vshra.s32 %v1627_v55, 16  ;;  %v466_v60 = vand.u32 65535, %v1576_v4  ;;  %v494_v4 = vand.u32 65535, %v1592_v15 }
 0x1c6   :  { %v359_v57 = vpop.xlane.xlu1 %358  ;;  %v361_v20 = vpop.xlane.xlu0 %360  ;;  %v522_v15 = vand.u32 65535, %v1608_v23  ;;  %v550_v23 = vand.u32 65535, %v1624_v47 }
 0x1c7   :  { %vm377_vm15 = vcmp.eq.f32.partialorder %v1524_v24, %v359_v57  ;;  %vm378_vm1 = vcmp.eq.f32.partialorder %v1526_v25, %v361_v20  ;;  %v1635_v62 = vcvt.s32.f32 %v551_v56  ;;  %v1637_v58 = vcvt.s32.f32 %v565_v19 }
 0x1c8   :  { %v1640_v63 = vsel %vm377_vm15, %v1533_v44, 128  ;;  %v1643_v59 = vsel %vm378_vm1, %v1533_v44, 128  ;;  %v452_v56 = vand.u32 65535, %v1563_v61  ;;  %v480_v61 = vand.u32 65535, %v1579_v5 }
 0x1c9   :  { %554 = vmin.xlane.f32.xlu1 %v1635_v62  ;;  %568 = vmin.xlane.f32.xlu0 %v1637_v58  ;;  %v579_v8 = vshra.s32 %v1640_v63, 16  ;;  %v593_v24 = vshra.s32 %v1643_v59, 16  ;;  %v508_v5 = vand.u32 65535, %v1595_v16  ;;  %v536_v16 = vand.u32 65535, %v1611_v42 }
 0x1ca   :  { %v363_v0 = vpop.xlane.xlu1 %362  ;;  %v564_v42 = vand.u32 65535, %v1627_v55  ;;  %v578_v47 = vand.u32 65535, %v1640_v63  ;;  %v592_v55 = vand.u32 65535, %v1643_v59 }
 0x1cb   :  { %vm379_vm2 = vcmp.eq.f32.partialorder %v1530_v41, %v363_v0  ;;  %v1650_v25 = vcvt.s32.f32 %v579_v8  ;;  %v1652_v10 = vcvt.s32.f32 %v593_v24  ;;  %v410_v41 = vand.u32 65535, %v1545_v51 }
 0x1cc   :  { %v1655_v1 = vsel %vm379_vm2, %v1533_v44, 128  ;;  %v426_v51 = vcvt.s32.f32 %v424_v7  ;;  %v440_v24 = vcvt.s32.f32 %v438_v14  ;;  %v454_v0 = vcvt.s32.f32 %v452_v56 }
 0x1cd   :  { %582 = vmin.xlane.f32.xlu1 %v1650_v25  ;;  %596 = vmin.xlane.f32.xlu0 %v1652_v10  ;;  %v607_v17 = vshra.s32 %v1655_v1, 16  ;;  %v412_v46 = vcvt.s32.f32 %v410_v41  ;;  %v468_v41 = vcvt.s32.f32 %v466_v60  ;;  %v482_v7 = vcvt.s32.f32 %v480_v61 }
 0x1ce   :  { %v496_v14 = vcvt.s32.f32 %v494_v4  ;;  %v510_v56 = vcvt.s32.f32 %v508_v5  ;;  %v606_v63 = vand.u32 65535, %v1655_v1  ;;  %v594_v4 = vcvt.s32.f32 %v592_v55 }
 0x1cf   :  { %v1660_v6 = vcvt.s32.f32 %v607_v17 }
 0x1d1   :  { %610 = vmin.xlane.f32.xlu1 %v1660_v6 }
 0x23e   :  { %v1666_v45 = vpop.xlane.xlu0 %400 }
 0x23f   :  { %vm402_vm3 = vcmp.eq.f32.partialorder %v1542_v43, %v1666_v45 }
 0x240   :  { %v403_v48 = vsel %vm402_vm3, %v398_v13, inf }
 0x241   :  { %404 = vmin.xlane.f32.xlu0 %v403_v48 }
 0x242   :  { %v1672_v19 = vpop.xlane.xlu1 %414  ;;  %v1674_v57 = vpop.xlane.xlu0 %428 }
 0x243   :  { %vm416_vm4 = vcmp.eq.f32.partialorder %v1555_v52, %v1672_v19  ;;  %vm430_vm5 = vcmp.eq.f32.partialorder %v1557_v53, %v1674_v57 }
 0x244   :  { %v417_v54 = vsel %vm416_vm4, %v412_v46, inf  ;;  %v431_v43 = vsel %vm430_vm5, %v426_v51, inf }
 0x245   :  { %418 = vmin.xlane.f32.xlu1 %v417_v54  ;;  %432 = vmin.xlane.f32.xlu0 %v431_v43  ;;  %v524_v54 = vcvt.s32.f32 %v522_v15  ;;  %v538_v43 = vcvt.s32.f32 %v536_v16 }
 0x246   :  { %v1682_v20 = vpop.xlane.xlu1 %442  ;;  %v1684_v8 = vpop.xlane.xlu0 %456 }
 0x247   :  { %vm444_vm6 = vcmp.eq.f32.partialorder %v1571_v2, %v1682_v20  ;;  %vm458_vm7 = vcmp.eq.f32.partialorder %v1573_v3, %v1684_v8 }
 0x248   :  { %v445_v52 = vsel %vm444_vm6, %v440_v24, inf  ;;  %v459_v53 = vsel %vm458_vm7, %v454_v0, inf  ;;  %v552_v24 = vcvt.s32.f32 %v550_v23  ;;  %v566_v0 = vcvt.s32.f32 %v564_v42 }
 0x249   :  { %446 = vmin.xlane.f32.xlu1 %v445_v52  ;;  %460 = vmin.xlane.f32.xlu0 %v459_v53  ;;  %v580_v53 = vcvt.s32.f32 %v578_v47 }
 0x24a   :  { %v1692_v17 = vpop.xlane.xlu1 %470  ;;  %v1694_v18 = vpop.xlane.xlu0 %484 }
 0x24b   :  { %vm472_vm8 = vcmp.eq.f32.partialorder %v1587_v11, %v1692_v17  ;;  %vm486_vm9 = vcmp.eq.f32.partialorder %v1589_v12, %v1694_v18 }
 0x24c   :  { %v473_v2 = vsel %vm472_vm8, %v468_v41, inf  ;;  %v487_v3 = vsel %vm486_vm9, %v482_v7, inf  ;;  %v608_v41 = vcvt.s32.f32 %v606_v63  ;;  %v407_v7 = vcvt.f32.s32 %v1666_v45 }
 0x24d   :  { %474 = vmin.xlane.f32.xlu1 %v473_v2  ;;  %488 = vmin.xlane.f32.xlu0 %v487_v3  ;;  %v421_v2 = vcvt.f32.s32 %v1672_v19  ;;  %v1257_v45 = vmov 1.0  }
 0x24e   :  { %v1702_v13 = vpop.xlane.xlu1 %498  ;;  %v1704_v48 = vpop.xlane.xlu0 %512  ;;  %v408_v3 = vshll.u32 %v407_v7, 16 }
 0x24f   :  { %vm500_vm10 = vcmp.eq.f32.partialorder %v1603_v21, %v1702_v13  ;;  %vm514_vm11 = vcmp.eq.f32.partialorder %v1605_v22, %v1704_v48 }
 0x250   :  { %v501_v11 = vsel %vm500_vm10, %v496_v14, inf  ;;  %v515_v12 = vsel %vm514_vm11, %v510_v56, inf  ;;  %v422_v14 = vshll.u32 %v421_v2, 16  ;;  %v449_v56 = vcvt.f32.s32 %v1682_v20 }
 0x251   :  { %502 = vmin.xlane.f32.xlu1 %v501_v11  ;;  %516 = vmin.xlane.f32.xlu0 %v515_v12  ;;  %v463_v11 = vcvt.f32.s32 %v1684_v8  ;;  %v491_v20 = vcvt.f32.s32 %v1694_v18  ;;  %v519_v18 = vcvt.f32.s32 %v1704_v48 }
 0x252   :  { %v1712_v46 = vpop.xlane.xlu1 %526  ;;  %v1714_v51 = vpop.xlane.xlu0 %540 }
 0x253   :  { %vm528_vm12 = vcmp.eq.f32.partialorder %v1619_v49, %v1712_v46  ;;  %vm542_vm13 = vcmp.eq.f32.partialorder %v1621_v50, %v1714_v51  ;;  %v492_v63 = vshll.u32 %v491_v20, 16  ;;  %v520_v2 = vshll.u32 %v519_v18, 16 }
 0x254   :  { %v529_v21 = vsel %vm528_vm12, %v524_v54, inf  ;;  %v543_v22 = vsel %vm542_vm13, %v538_v43, inf  ;;  %v547_v48 = vcvt.f32.s32 %v1714_v51 }
 0x255   :  { %530 = vmin.xlane.f32.xlu1 %v529_v21  ;;  %544 = vmin.xlane.f32.xlu0 %v543_v22  ;;  %v464_v21 = vshll.u32 %v463_v11, 16  ;;  %v477_v22 = vcvt.f32.s32 %v1692_v17  ;;  %v505_v17 = vcvt.f32.s32 %v1702_v13  ;;  %v533_v13 = vcvt.f32.s32 %v1712_v46 }
 0x256   :  { %v1722_v60 = vpop.xlane.xlu1 %554  ;;  %v1724_v61 = vpop.xlane.xlu0 %568  ;;  %v548_v11 = vshll.u32 %v547_v48, 16 }
 0x257   :  { %vm556_vm14 = vcmp.eq.f32.partialorder %v1635_v62, %v1722_v60  ;;  %vm570_vm15 = vcmp.eq.f32.partialorder %v1637_v58, %v1724_v61  ;;  %v506_v7 = vshll.u32 %v505_v17, 16  ;;  %v561_v46 = vcvt.f32.s32 %v1722_v60 }
 0x258   :  { %v557_v49 = vsel %vm556_vm14, %v552_v24, inf  ;;  %v571_v50 = vsel %vm570_vm15, %v566_v0, inf  ;;  %v575_v51 = vcvt.f32.s32 %v1724_v61 }
 0x259   :  { %558 = vmin.xlane.f32.xlu1 %v557_v49  ;;  %572 = vmin.xlane.f32.xlu0 %v571_v50  ;;  %v478_v50 = vshll.u32 %v477_v22, 16 }
 0x25a   :  { %v1731_v52 = vpop.xlane.xlu1 %582  ;;  %v1733_v59 = vpop.xlane.xlu0 %596 }
 0x25b   :  { %vm584_vm1 = vcmp.eq.f32.partialorder %v1650_v25, %v1731_v52  ;;  %vm598_vm2 = vcmp.eq.f32.partialorder %v1652_v10, %v1733_v59  ;;  %v435_v10 = vcvt.f32.s32 %v1674_v57  ;;  %v450_v57 = vshll.u32 %v449_v56, 16 }
 0x25c   :  { %v585_v62 = vsel %vm584_vm1, %v580_v53, inf  ;;  %v599_v58 = vsel %vm598_vm2, %v594_v4, inf  ;;  %v534_v56 = vshll.u32 %v533_v13, 16  ;;  %v589_v60 = vcvt.f32.s32 %v1731_v52 }
 0x25d   :  { %586 = vmin.xlane.f32.xlu1 %v585_v62  ;;  %600 = vmin.xlane.f32.xlu0 %v599_v58  ;;  %v603_v61 = vcvt.f32.s32 %v1733_v59 }
 0x25e   :  { %v1739_v5 = vpop.xlane.xlu1 %610 }
 0x25f   :  { %vm612_vm3 = vcmp.eq.f32.partialorder %v1660_v6, %v1739_v5  ;;  %v436_v6 = vshll.u32 %v435_v10, 16  ;;  %v617_v52 = vcvt.f32.s32 %v1739_v5 }
 0x260   :  { %v613_v1 = vsel %vm612_vm3, %v608_v41, inf }
 0x261   :  { %614 = vmin.xlane.f32.xlu1 %v613_v1 }
 0x2ce   :  { %v405_v25 = vpop.xlane.xlu0 %404 }
 0x2cf   :  { %v406_v15 = vcvt.f32.s32 %v405_v25 }
 0x2d1   :  { %v409_v16 = vadd.s32 %v408_v3, %v406_v15 }
 0x2d2   :  { %v419_v12 = vpop.xlane.xlu1 %418  ;;  %v433_v23 = vpop.xlane.xlu0 %432 }
 0x2d3   :  { %v420_v42 = vcvt.f32.s32 %v419_v12  ;;  %v434_v54 = vcvt.f32.s32 %v433_v23  ;;  %vm620_vm4 = vcmp.eq.s32.totalorder %v1533_v44, %v409_v16 }
 0x2d4   :  { %1137 = vmatprep.mubr.msk.f32.mxu1 %vm620_vm4, %v1257_v45 }
 0x2d5   :  { %v423_v19 = vadd.s32 %v422_v14, %v420_v42  ;;  %v437_v43 = vadd.s32 %v436_v6, %v434_v54 }
 0x2d6   :  { %v447_v47 = vpop.xlane.xlu1 %446  ;;  %v461_v8 = vpop.xlane.xlu0 %460 }
 0x2d7   :  { %v448_v55 = vcvt.f32.s32 %v447_v47  ;;  %v462_v24 = vcvt.f32.s32 %v461_v8  ;;  %vm621_vm5 = vcmp.eq.s32.totalorder %v1533_v44, %v423_v19  ;;  %vm622_vm6 = vcmp.eq.s32.totalorder %v1533_v44, %v437_v43 }
 0x2d8   :  { %1138 = vmatmul.mubr.msk.f32.vlgmr.msra.gmra.mrb[0].mxu1 %vm621_vm5, %v1257_v45  ;;  %v562_v43 = vshll.u32 %v561_v46, 16 }
 0x2d9   :  { %v451_v0 = vadd.s32 %v450_v57, %v448_v55  ;;  %v465_v49 = vadd.s32 %v464_v21, %v462_v24  ;;  %1140 = vmatprep.mubr.msk.f32.mxu1 %vm622_vm6, %v1257_v45  ;;  %v576_v57 = vshll.u32 %v575_v51, 16  ;;  %v590_v24 = vshll.u32 %v589_v60, 16 }
 0x2da   :  { %v475_v53 = vpop.xlane.xlu1 %474  ;;  %v489_v4 = vpop.xlane.xlu0 %488 }
 0x2db   :  { %v476_v62 = vcvt.f32.s32 %v475_v53  ;;  %v490_v58 = vcvt.f32.s32 %v489_v4  ;;  %vm623_vm7 = vcmp.eq.s32.totalorder %v1533_v44, %v451_v0  ;;  %vm624_vm8 = vcmp.eq.s32.totalorder %v1533_v44, %v465_v49 }
 0x2dc   :  { %1141 = vmatmul.mubr.msk.f32.gmra.mrb[2].mxu1 %vm623_vm7, %v1257_v45  ;;  %v604_v0 = vshll.u32 %v603_v61, 16  ;;  %v618_v4 = vshll.u32 %v617_v52, 16 }
 0x2dd   :  { %v479_v41 = vadd.s32 %v478_v50, %v476_v62  ;;  %v493_v1 = vadd.s32 %v492_v63, %v490_v58  ;;  %1143 = vmatprep.mubr.msk.f32.mxu1 %vm624_vm8, %v1257_v45 }
 0x2de   :  { %v503_v25 = vpop.xlane.xlu1 %502  ;;  %v517_v3 = vpop.xlane.xlu0 %516 }
 0x2df   :  { %v504_v10 = vcvt.f32.s32 %v503_v25  ;;  %v518_v15 = vcvt.f32.s32 %v517_v3  ;;  %vm625_vm9 = vcmp.eq.s32.totalorder %v1533_v44, %v479_v41  ;;  %vm626_vm10 = vcmp.eq.s32.totalorder %v1533_v44, %v493_v1 }
 0x2e0   :  { %1144 = vmatmul.mubr.msk.f32.gmra.mrb[4].mxu1 %vm625_vm9, %v1257_v45 }
 0x2e1   :  { %v507_v16 = vadd.s32 %v506_v7, %v504_v10  ;;  %v521_v14 = vadd.s32 %v520_v2, %v518_v15  ;;  %1146 = vmatprep.mubr.msk.f32.mxu1 %vm626_vm10, %v1257_v45 }
 0x2e2   :  { %v531_v12 = vpop.xlane.xlu1 %530  ;;  %v545_v23 = vpop.xlane.xlu0 %544 }
 0x2e3   :  { %v532_v6 = vcvt.f32.s32 %v531_v12  ;;  %v546_v42 = vcvt.f32.s32 %v545_v23  ;;  %vm627_vm11 = vcmp.eq.s32.totalorder %v1533_v44, %v507_v16  ;;  %vm628_vm12 = vcmp.eq.s32.totalorder %v1533_v44, %v521_v14 }
 0x2e4   :  { %1147 = vmatmul.mubr.msk.f32.gmra.mrb[6].mxu1 %vm627_vm11, %v1257_v45 }
 0x2e5   :  { %v535_v54 = vadd.s32 %v534_v56, %v532_v6  ;;  %v549_v19 = vadd.s32 %v548_v11, %v546_v42  ;;  %1149 = vmatprep.mubr.msk.f32.mxu1 %vm628_vm12, %v1257_v45 }
 0x2e6   :  { %v559_v21 = vpop.xlane.xlu1 %558  ;;  %v573_v22 = vpop.xlane.xlu0 %572 }
 0x2e7   :  { %v560_v20 = vcvt.f32.s32 %v559_v21  ;;  %v574_v47 = vcvt.f32.s32 %v573_v22  ;;  %vm629_vm13 = vcmp.eq.s32.totalorder %v1533_v44, %v535_v54  ;;  %vm630_vm14 = vcmp.eq.s32.totalorder %v1533_v44, %v549_v19 }
 0x2e8   :  { %1150 = vmatmul.mubr.msk.f32.gmra.mrb[8].mxu1 %vm629_vm13, %v1257_v45 }
 0x2e9   :  { %v563_v8 = vadd.s32 %v562_v43, %v560_v20  ;;  %v577_v55 = vadd.s32 %v576_v57, %v574_v47  ;;  %1152 = vmatprep.mubr.msk.f32.mxu1 %vm630_vm14, %v1257_v45 }
 0x2ea   :  { %v587_v49 = vpop.xlane.xlu1 %586  ;;  %v601_v59 = vpop.xlane.xlu0 %600 }
 0x2eb   :  { %v588_v50 = vcvt.f32.s32 %v587_v49  ;;  %v602_v63 = vcvt.f32.s32 %v601_v59  ;;  %vm631_vm15 = vcmp.eq.s32.totalorder %v1533_v44, %v563_v8  ;;  %vm632_vm1 = vcmp.eq.s32.totalorder %v1533_v44, %v577_v55 }
 0x2ec   :  { %1153 = vmatmul.mubr.msk.f32.gmra.mrb[10].mxu1 %vm631_vm15, %v1257_v45 }
 0x2ed   :  { %v591_v17 = vadd.s32 %v590_v24, %v588_v50  ;;  %v605_v18 = vadd.s32 %v604_v0, %v602_v63  ;;  %1155 = vmatprep.mubr.msk.f32.mxu1 %vm632_vm1, %v1257_v45 }
 0x2ee   :  { %v615_v53 = vpop.xlane.xlu1 %614 }
 0x2ef   :  { %v616_v62 = vcvt.f32.s32 %v615_v53  ;;  %vm633_vm2 = vcmp.eq.s32.totalorder %v1533_v44, %v591_v17  ;;  %vm634_vm3 = vcmp.eq.s32.totalorder %v1533_v44, %v605_v18 }
 0x2f0   :  { %1156 = vmatmul.mubr.msk.f32.gmra.mrb[12].mxu1 %vm633_vm2, %v1257_v45 }
 0x2f1   :  { %v619_v5 = vadd.s32 %v618_v4, %v616_v62  ;;  %1158 = vmatprep.mubr.msk.f32.mxu1 %vm634_vm3, %v1257_v45 }
 0x2f3   :  { %vm635_vm4 = vcmp.eq.s32.totalorder %v1533_v44, %v619_v5 }
 0x2f4   :  { %1159 = vmatmul.mubr.msk.f32.gmra.mrb[14].mxu1 %vm635_vm4, %v1257_v45 }
 0x3ab   :  { %v1139_v58 = vpop.f32.mrb[0].mxu1 }
 0x3ac   :  { %814 = vst.msk [vmem:[%s1902_s3 + $0x8] sm:$0xff] %vm50_vm0, %v1139_v58  ;;  %v830_v41 = vsub.f32 %v1139_v58, %v1380_v26  ;;  %v734_v1 = vpop.f32.mrb[1].mxu1 }
 0x3ad   :  { %813 = vst.msk [vmem:[%s1902_s3] sm:$0xff] %vm50_vm0, %v734_v1  ;;  %v829_v7 = vsub.f32 %v734_v1, %v1317_v9 }
 0x3ae   :  { %v846_v2 = vmul.f32 %v830_v41, %v830_v41 }
 0x3af   :  { %v845_v44 = vmul.f32 %v829_v7, %v829_v7  ;;  %v1142_v13 = vpop.f32.mrb[2].mxu1 }
 0x3b0   :  { %v862_v45 = vsel %vm50_vm0, %v846_v2, 0.0  ;;  %816 = vst.msk [vmem:[%s1902_s3 + $0x18] sm:$0xff] %vm50_vm0, %v1142_v13  ;;  %v832_v26 = vsub.f32 %v1142_v13, %v1394_v28  ;;  %v744_v48 = vpop.f32.mrb[3].mxu1 }
 0x3b1   :  { %v861_v25 = vsel %vm50_vm0, %v845_v44, 0.0  ;;  %815 = vst.msk [vmem:[%s1902_s3 + $0x10] sm:$0xff] %vm50_vm0, %v744_v48  ;;  %v831_v9 = vsub.f32 %v744_v48, %v1385_v27 }
 0x3b2   :  { %v863_v3 = vadd.f32 %v862_v45, %v861_v25  ;;  %v848_v10 = vmul.f32 %v832_v26, %v832_v26 }
 0x3b3   :  { %v847_v15 = vmul.f32 %v831_v9, %v831_v9  ;;  %v1145_v16 = vpop.f32.mrb[4].mxu1 }
 0x3b4   :  { %818 = vst.msk [vmem:[%s1902_s3 + $0x28] sm:$0xff] %vm50_vm0, %v1145_v16  ;;  %v834_v28 = vsub.f32 %v1145_v16, %v1408_v30  ;;  %v754_v14 = vpop.f32.mrb[5].mxu1  ;;  %v866_v46 = vsel %vm50_vm0, %v848_v10, 0.0 }
 0x3b5   :  { %v864_v56 = vsel %vm50_vm0, %v847_v15, 0.0  ;;  %817 = vst.msk [vmem:[%s1902_s3 + $0x20] sm:$0xff] %vm50_vm0, %v754_v14  ;;  %v833_v27 = vsub.f32 %v754_v14, %v1399_v29 }
 0x3b6   :  { %v865_v11 = vadd.f32 %v864_v56, %v863_v3  ;;  %v850_v51 = vmul.f32 %v834_v28, %v834_v28 }
 0x3b7   :  { %v849_v12 = vmul.f32 %v833_v27, %v833_v27  ;;  %v1148_v23 = vpop.f32.mrb[6].mxu1 }
 0x3b8   :  { %v867_v6 = vadd.f32 %v866_v46, %v865_v11  ;;  %820 = vst.msk [vmem:[%s1902_s3 + $0x38] sm:$0xff] %vm50_vm0, %v1148_v23  ;;  %v836_v30 = vsub.f32 %v1148_v23, %v1422_v32  ;;  %v764_v42 = vpop.f32.mrb[7].mxu1  ;;  %v870_v43 = vsel %vm50_vm0, %v850_v51, 0.0 }
 0x3b9   :  { %v868_v54 = vsel %vm50_vm0, %v849_v12, 0.0  ;;  %819 = vst.msk [vmem:[%s1902_s3 + $0x30] sm:$0xff] %vm50_vm0, %v764_v42  ;;  %v835_v29 = vsub.f32 %v764_v42, %v1413_v31 }
 0x3ba   :  { %v869_v19 = vadd.f32 %v868_v54, %v867_v6  ;;  %v852_v57 = vmul.f32 %v836_v30, %v836_v30 }
 0x3bb   :  { %v851_v60 = vmul.f32 %v835_v29, %v835_v29  ;;  %v1151_v61 = vpop.f32.mrb[8].mxu1 }
 0x3bc   :  { %v871_v21 = vadd.f32 %v870_v43, %v869_v19  ;;  %822 = vst.msk [vmem:[%s1902_s3 + $0x48] sm:$0xff] %vm50_vm0, %v1151_v61  ;;  %v838_v32 = vsub.f32 %v1151_v61, %v1436_v34  ;;  %v774_v22 = vpop.f32.mrb[9].mxu1  ;;  %v874_v8 = vsel %vm50_vm0, %v852_v57, 0.0 }
 0x3bd   :  { %v872_v20 = vsel %vm50_vm0, %v851_v60, 0.0  ;;  %821 = vst.msk [vmem:[%s1902_s3 + $0x40] sm:$0xff] %vm50_vm0, %v774_v22  ;;  %v837_v31 = vsub.f32 %v774_v22, %v1427_v33 }
 0x3be   :  { %v873_v47 = vadd.f32 %v872_v20, %v871_v21  ;;  %v854_v55 = vmul.f32 %v838_v32, %v838_v32 }
 0x3bf   :  { %v853_v24 = vmul.f32 %v837_v31, %v837_v31  ;;  %v1154_v0 = vpop.f32.mrb[10].mxu1 }
 0x3c0   :  { %v875_v52 = vadd.f32 %v874_v8, %v873_v47  ;;  %824 = vst.msk [vmem:[%s1902_s3 + $0x58] sm:$0xff] %vm50_vm0, %v1154_v0  ;;  %v840_v34 = vsub.f32 %v1154_v0, %v1450_v36  ;;  %v784_v49 = vpop.f32.mrb[11].mxu1  ;;  %v878_v63 = vsel %vm50_vm0, %v854_v55, 0.0 }
 0x3c1   :  { %v876_v59 = vsel %vm50_vm0, %v853_v24, 0.0  ;;  %823 = vst.msk [vmem:[%s1902_s3 + $0x50] sm:$0xff] %vm50_vm0, %v784_v49  ;;  %v839_v33 = vsub.f32 %v784_v49, %v1441_v35 }
 0x3c2   :  { %v877_v50 = vadd.f32 %v876_v59, %v875_v52  ;;  %v856_v17 = vmul.f32 %v840_v34, %v840_v34 }
 0x3c3   :  { %v855_v18 = vmul.f32 %v839_v33, %v839_v33  ;;  %v1157_v53 = vpop.f32.mrb[12].mxu1 }
 0x3c4   :  { %v879_v4 = vadd.f32 %v878_v63, %v877_v50  ;;  %826 = vst.msk [vmem:[%s1902_s3 + $0x68] sm:$0xff] %vm50_vm0, %v1157_v53  ;;  %v842_v36 = vsub.f32 %v1157_v53, %v1464_v38  ;;  %v794_v62 = vpop.f32.mrb[13].mxu1  ;;  %v882_v41 = vsel %vm50_vm0, %v856_v17, 0.0 }
 0x3c5   :  { %v880_v5 = vsel %vm50_vm0, %v855_v18, 0.0  ;;  %825 = vst.msk [vmem:[%s1902_s3 + $0x60] sm:$0xff] %vm50_vm0, %v794_v62  ;;  %v841_v35 = vsub.f32 %v794_v62, %v1455_v37 }
 0x3c6   :  { %v881_v58 = vadd.f32 %v880_v5, %v879_v4  ;;  %v858_v1 = vmul.f32 %v842_v36, %v842_v36 }
 0x3c7   :  { %v857_v7 = vmul.f32 %v841_v35, %v841_v35  ;;  %v1160_v2 = vpop.f32.mrb[14].mxu1 }
 0x3c8   :  { %v883_v44 = vadd.f32 %v882_v41, %v881_v58  ;;  %828 = vst.msk [vmem:[%s1902_s3 + $0x78] sm:$0xff] %vm50_vm0, %v1160_v2  ;;  %v844_v38 = vsub.f32 %v1160_v2, %v1478_v40  ;;  %v804_v13 = vpop.f32.mrb[15].mxu1  ;;  %v886_v48 = vsel %vm50_vm0, %v858_v1, 0.0 }
 0x3c9   :  { %v884_v45 = vsel %vm50_vm0, %v857_v7, 0.0  ;;  %827 = vst.msk [vmem:[%s1902_s3 + $0x70] sm:$0xff] %vm50_vm0, %v804_v13  ;;  %v843_v37 = vsub.f32 %v804_v13, %v1469_v39 }
 0x3ca   :  { %v885_v26 = vadd.f32 %v884_v45, %v883_v44  ;;  %v860_v25 = vmul.f32 %v844_v38, %v844_v38 }
 0x3cb   :  { %v859_v9 = vmul.f32 %v843_v37, %v843_v37 }
 0x3cc   :  { %v887_v3 = vadd.f32 %v886_v48, %v885_v26  ;;  %v890_v40 = vsel %vm50_vm0, %v860_v25, 0.0 }
 0x3cd   :  { %v888_v10 = vsel %vm50_vm0, %v859_v9, 0.0 }
 0x3ce   :  { %v889_v15 = vadd.f32 %v888_v10, %v887_v3 }
 0x3d0   :  { %v891_v16 = vadd.f32 %v890_v40, %v889_v15 }
 0x3d2   :  { %892 = vadd.xlane.f32.xlu0 %v891_v16 }
 0x45f   :  { %v893_v28 = vpop.xlane.xlu0 %892 }
 0x460   :  { %v894_v14 = vrot.slane %v893_v28, 4 }
 0x462   :  { %v895_v56 = vadd.f32 %v894_v14, %v893_v28 }
 0x464   :  { %v896_v27 = vrot.slane %v895_v56, 2 }
 0x466   :  { %v897_v11 = vadd.f32 %v896_v27, %v895_v56 }
 0x468   :  { %v898_v46 = vrot.slane %v897_v11, 1 }
 0x46a   :  { %v899_v39 = vadd.f32 %v898_v46, %v897_v11 }
 0x46c   :  { %1241 = vpush %v899_v39 }
 0x49d   :  { %s1242_s3 = spop %1241 }
 0x49e   :  { %902 = sst [smem:[#allocation2]] %s1242_s3 }
 0x49f   :  { %1254 = shalt.err (!%p1251_p2)
}
 0x4a0   :  { %s1258_s9 = smov [#allocation2]  }
 0x4a1   :  { %912 = dma.smem_to_hbm %s1258_s9, 16, %s1903_s4, [#allocation3]  }
 0x4a2   :  { %1255 = dma.done.wait [#allocation3], 16  }
 0x4a3   :  { %1256 = vsyncadd [#allocation3], 4294967280 }
 0x4a4   :  { %918 = sfence }
 0x4a5   :  { %919 = vsyncpa [#allocation3], 1 }

</bundles_post_ra>
